<compile_context>
chip_gen: v6e
topology: v6e:2x2x1
jax: 0.10.0
libtpu: 0.0.40
codegen_flags: <defaults>
</compile_context>

<pallas_src>
import functools
import math

import jax
import jax.numpy as jnp
import numpy as np
from jax.experimental import pallas as pl
from jax.experimental.pallas import tpu as pltpu


def _round_up(x, m):
    return ((x + m - 1) // m) * m


def _gcn_kernel(e_ref, d0_ref, d1_ref, x_ref, w1a_ref, w1b_ref, w2_ref, out_ref,
                *, tile_n):
    """One grid step computes output rows [i*tile_n, (i+1)*tile_n)."""
    i = pl.program_id(0)

    e = e_ref[...]                                   # (tile_n, Npad)  stream dtype
    x_all = x_ref[...]                               # (Npad, Fin)     stream dtype (resident)

    # Feature aggregation, reassociated:  e @ (x @ W1a) == (e @ x) @ W1a.
    # The big matmul runs in the (bf16) stream dtype on the MXU with f32 acc.
    ex = jnp.dot(e, x_all, preferred_element_type=jnp.float32)             # (tile_n, Fin) f32
    agg = jnp.dot(ex, w1a_ref[...], preferred_element_type=jnp.float32)    # (tile_n, Fp)

    # Shape-feature term: sum_j e[i,j] * dist[i,j,c]  ->  outer product with w1b rows.
    # Elementwise math kept in f32 (v5e VPU has no native bf16 arithmetic).
    ef = e.astype(jnp.float32)
    ed0 = jnp.sum(ef * d0_ref[...].astype(jnp.float32), axis=1, keepdims=True)  # (tile_n, 1)
    ed1 = jnp.sum(ef * d1_ref[...].astype(jnp.float32), axis=1, keepdims=True)
    shape_term = ed0 * w1b_ref[0:1, :] + ed1 * w1b_ref[1:2, :]                  # (tile_n, Fp)

    # Self / target-node term (self_connection=False): x[i] @ W2.
    row0 = pl.multiple_of(i * tile_n, tile_n)
    x_tile = x_ref[pl.ds(row0, tile_n), :].astype(jnp.float32)                  # (tile_n, Fin)
    self_term = jnp.dot(x_tile, w2_ref[...], preferred_element_type=jnp.float32)

    out_ref[...] = agg + shape_term + self_term


@functools.partial(jax.jit, static_argnames=("compute_dtype", "tile_n"))
def gcn_layer_forward(x, edges, distance_matrix, w1, w2, *,
                      compute_dtype=jnp.bfloat16, tile_n=256):
    """GCNLayer forward (self_connection=False, include_shape_feature=True).

    x:(N,Fin) edges:(N,N) distance_matrix:(N,N,2) w1:(Fout,Fin+2) w2:(Fout,Fin).
    Returns (N, Fout) float32.
    """
    n, fin = x.shape
    fout = w1.shape[0]
    stream_bytes = jnp.dtype(compute_dtype).itemsize

    # ---- tiling: row-tile the NxN streams, keep x + weights resident --------
    tile = min(tile_n, _round_up(n, 8))          # 256 = MXU-aligned on v6e/v7x
    n_pad = _round_up(n, tile)
    # Keep double-buffered edge/d0/d1 tiles comfortably inside the 32 MiB
    # scoped-VMEM default (v7x only has 64 MiB physical VMEM).
    while 3 * 2 * tile * n_pad * stream_bytes > (16 << 20) and tile > 8:
        tile //= 2
        n_pad = _round_up(n, tile)
    assert tile % 8 == 0 and n_pad % tile == 0

    fp = _round_up(fout, 128)                    # lane-dense output width

    # ---- glue: split distance channels, pad, pre-transpose weights ----------
    rpad = n_pad - n
    e_p = jnp.pad(edges, ((0, rpad), (0, rpad))).astype(compute_dtype)
    d0_p = jnp.pad(distance_matrix[:, :, 0], ((0, rpad), (0, rpad))).astype(compute_dtype)
    d1_p = jnp.pad(distance_matrix[:, :, 1], ((0, rpad), (0, rpad))).astype(compute_dtype)
    x_p = jnp.pad(x, ((0, rpad), (0, 0))).astype(compute_dtype)

    cpad = fp - fout
    w1a_p = jnp.pad(jnp.transpose(w1[:, :fin]), ((0, 0), (0, cpad))).astype(jnp.float32)
    w1b_p = jnp.pad(jnp.transpose(w1[:, fin:fin + 2]), ((0, 6), (0, cpad))).astype(jnp.float32)
    w2_p = jnp.pad(jnp.transpose(w2), ((0, 0), (0, cpad))).astype(jnp.float32)

    grid = (n_pad // tile,)

    flops = (2 * n_pad * n_pad * fin            # e @ x
             + 2 * n_pad * fin * fp             # (e@x) @ w1a
             + 2 * n_pad * fin * fp             # x @ w2
             + 4 * n_pad * n_pad                # e*d0, e*d1 products + reductions
             + 6 * n_pad * fp)                  # shape term + final adds
    bytes_accessed = (3 * n_pad * n_pad * stream_bytes     # edges, d0, d1
                      + n_pad * fin * stream_bytes         # x
                      + n_pad * fp * 4                     # out
                      + (2 * fin + 8) * fp * 4)            # weights

    out = pl.pallas_call(
        functools.partial(_gcn_kernel, tile_n=tile),
        out_shape=jax.ShapeDtypeStruct((n_pad, fp), jnp.float32),
        grid_spec=pltpu.PrefetchScalarGridSpec(
            num_scalar_prefetch=0,
            grid=grid,
            in_specs=[
                pl.BlockSpec((tile, n_pad), lambda i: (i, 0)),   # edges row-tile
                pl.BlockSpec((tile, n_pad), lambda i: (i, 0)),   # dist channel 0
                pl.BlockSpec((tile, n_pad), lambda i: (i, 0)),   # dist channel 1
                pl.BlockSpec((n_pad, fin), lambda i: (0, 0)),    # x (resident)
                pl.BlockSpec((fin, fp), lambda i: (0, 0)),       # w1a^T (resident)
                pl.BlockSpec((8, fp), lambda i: (0, 0)),         # w1b^T padded (resident)
                pl.BlockSpec((fin, fp), lambda i: (0, 0)),       # w2^T (resident)
            ],
            out_specs=pl.BlockSpec((tile, fp), lambda i: (i, 0)),
        ),
        compiler_params=pltpu.CompilerParams(
            dimension_semantics=("parallel",),      # independent row tiles -> dual-TC on v7x
            vmem_limit_bytes=32 * 1024 * 1024,
        ),
        cost_estimate=pl.CostEstimate(
            flops=flops, transcendentals=0, bytes_accessed=bytes_accessed),
    )(e_p, d0_p, d1_p, x_p, w1a_p, w1b_p, w2_p)

    return out[:n, :fout]


def _kaiming_uniform(key, shape, fan_in):
    # nn.init.kaiming_uniform_(w, a=sqrt(5)) -> bound = 1/sqrt(fan_in)
    bound = 1.0 / math.sqrt(fan_in)
    return jax.random.uniform(key, shape, jnp.float32, -bound, bound)


def _reference(x, edges, distance_matrix, w1, w2):
    """Vectorized f32 replica of the PyTorch per-node loop (independent of the
    kernel's reassociated decomposition)."""
    n, fin = x.shape
    xs = jnp.broadcast_to(x[None, :, :], (n, n, fin))
    x_with_shape = jnp.concatenate([xs, distance_matrix], axis=2)   # (n, n, fin+2)
    messages = jnp.einsum("ijk,ok->ijo", x_with_shape, w1)          # (n, n, fout)
    messages = messages * edges[:, :, None]
    aggregate = jnp.sum(messages, axis=1)                           # (n, fout)
    return x @ w2.T + aggregate


if __name__ == "__main__":
    key = jax.random.PRNGKey(0)

    # (N, Fin, Fout): module-default-sized tiny graph, plus a larger graph that
    # actually exercises the row-tiled, pipelined grid (padded to 2 x 256 rows).
    configs = [(8, 16, 32), (384, 16, 32)]

    for (n, fin, fout) in configs:
        key, k_x, k_e, k_d, k_w1, k_w2 = jax.random.split(key, 6)
        x = jax.random.normal(k_x, (n, fin), jnp.float32)
        edges = jax.random.uniform(k_e, (n, n), jnp.float32)
        dist = jax.random.normal(k_d, (n, n, 2), jnp.float32)
        w1 = _kaiming_uniform(k_w1, (fout, fin + 2), fin + 2)
        w2 = _kaiming_uniform(k_w2, (fout, fin), fin)

        ref = np.asarray(_reference(x, edges, dist, w1, w2))

        # f32 streams: tight check of the decomposition / tiling / padding.
        out_f32 = jax.block_until_ready(
            gcn_layer_forward(x, edges, dist, w1, w2, compute_dtype=jnp.float32))
        np.testing.assert_allclose(np.asarray(out_f32), ref, rtol=1e-4, atol=1e-3)

        # bf16 streams (default fast path, HBM-bound): looser tolerance expected.
        out_bf16 = jax.block_until_ready(
            gcn_layer_forward(x, edges, dist, w1, w2))
        np.testing.assert_allclose(np.asarray(out_bf16), ref, rtol=3e-2, atol=2e-1)

    print("KERNEL_OK")
</pallas_src>

<mosaic_0001>
module attributes {stable_mosaic.version = 11 : i64} {
  func.func @_gcn_kernel(%arg0: i32, %arg1: memref<8x8xf32, #tpu.memory_space<vmem>>, %arg2: memref<8x8xf32, #tpu.memory_space<vmem>>, %arg3: memref<8x8xf32, #tpu.memory_space<vmem>>, %arg4: memref<8x16xf32, #tpu.memory_space<vmem>>, %arg5: memref<16x128xf32, #tpu.memory_space<vmem>>, %arg6: memref<8x128xf32, #tpu.memory_space<vmem>>, %arg7: memref<16x128xf32, #tpu.memory_space<vmem>>, %arg8: memref<8x128xf32, #tpu.memory_space<vmem>>) attributes {dimension_semantics = [#tpu.dimension_semantics<parallel>], iteration_bounds = array<i64: 1>, scalar_prefetch = 0 : i64, scratch_operands = 0 : i64, tpu.core_type = #tpu.core_type<tc>, window_params = [{transform_indices = @transform_0, window_bounds = array<i64: 8, 8>}, {transform_indices = @transform_1, window_bounds = array<i64: 8, 8>}, {transform_indices = @transform_2, window_bounds = array<i64: 8, 8>}, {pipeline_mode = #tpu.pipeline_mode<synchronous>, transform_indices = @transform_3, window_bounds = array<i64: 8, 16>}, {pipeline_mode = #tpu.pipeline_mode<synchronous>, transform_indices = @transform_4, window_bounds = array<i64: 16, 128>}, {pipeline_mode = #tpu.pipeline_mode<synchronous>, transform_indices = @transform_5, window_bounds = array<i64: 8, 128>}, {pipeline_mode = #tpu.pipeline_mode<synchronous>, transform_indices = @transform_6, window_bounds = array<i64: 16, 128>}, {transform_indices = @transform_7, window_bounds = array<i64: 8, 128>}]} {
    %c0 = arith.constant 0 : index
    %c0_0 = arith.constant 0 : index
    %0 = vector.load %arg1[%c0, %c0_0] : memref<8x8xf32, #tpu.memory_space<vmem>>, vector<8x8xf32>
    %c0_1 = arith.constant 0 : index
    %c0_2 = arith.constant 0 : index
    %1 = vector.load %arg4[%c0_1, %c0_2] : memref<8x16xf32, #tpu.memory_space<vmem>>, vector<8x16xf32>
    %cst = arith.constant dense<0.000000e+00> : vector<8x16xf32>
    %2 = tpu.matmul %0, %1, %cst {dimension_numbers = #tpu.dot_dimension_numbers<[1], [0], [0], [1], [0, 0, 1, 1], [], []>} : vector<8x8xf32>, vector<8x16xf32>, vector<8x16xf32> -> vector<8x16xf32>
    %c0_3 = arith.constant 0 : index
    %c0_4 = arith.constant 0 : index
    %3 = vector.load %arg5[%c0_3, %c0_4] : memref<16x128xf32, #tpu.memory_space<vmem>>, vector<16x128xf32>
    %cst_5 = arith.constant dense<0.000000e+00> : vector<8x128xf32>
    %4 = tpu.matmul %2, %3, %cst_5 {dimension_numbers = #tpu.dot_dimension_numbers<[1], [0], [0], [1], [0, 0, 1, 1], [], []>} : vector<8x16xf32>, vector<16x128xf32>, vector<8x128xf32> -> vector<8x128xf32>
    %c0_6 = arith.constant 0 : index
    %c0_7 = arith.constant 0 : index
    %5 = vector.load %arg2[%c0_6, %c0_7] : memref<8x8xf32, #tpu.memory_space<vmem>>, vector<8x8xf32>
    %6 = arith.mulf %0, %5 : vector<8x8xf32>
    %cst_8 = arith.constant dense<0.000000e+00> : vector<8xf32>
    %7 = vector.multi_reduction <add>, %6, %cst_8 [1] : vector<8x8xf32> to vector<8xf32>
    %8 = vector.shape_cast %7 : vector<8xf32> to vector<8x1xf32>
    %c0_9 = arith.constant 0 : index
    %c0_10 = arith.constant 0 : index
    %9 = vector.load %arg3[%c0_9, %c0_10] : memref<8x8xf32, #tpu.memory_space<vmem>>, vector<8x8xf32>
    %10 = arith.mulf %0, %9 : vector<8x8xf32>
    %cst_11 = arith.constant dense<0.000000e+00> : vector<8xf32>
    %11 = vector.multi_reduction <add>, %10, %cst_11 [1] : vector<8x8xf32> to vector<8xf32>
    %12 = vector.shape_cast %11 : vector<8xf32> to vector<8x1xf32>
    %c0_12 = arith.constant 0 : index
    %c0_13 = arith.constant 0 : index
    %13 = vector.load %arg6[%c0_12, %c0_13] : memref<8x128xf32, #tpu.memory_space<vmem>>, vector<1x128xf32>
    %14 = vector.broadcast %8 : vector<8x1xf32> to vector<8x128xf32>
    %15 = vector.broadcast %13 : vector<1x128xf32> to vector<8x128xf32>
    %16 = arith.mulf %14, %15 : vector<8x128xf32>
    %c1 = arith.constant 1 : index
    %c0_14 = arith.constant 0 : index
    %17 = vector.load %arg6[%c1, %c0_14] : memref<8x128xf32, #tpu.memory_space<vmem>>, vector<1x128xf32>
    %18 = vector.broadcast %12 : vector<8x1xf32> to vector<8x128xf32>
    %19 = vector.broadcast %17 : vector<1x128xf32> to vector<8x128xf32>
    %20 = arith.mulf %18, %19 : vector<8x128xf32>
    %21 = arith.addf %16, %20 : vector<8x128xf32>
    %c8_i32 = arith.constant 8 : i32
    %22 = arith.muli %arg0, %c8_i32 : i32
    %23 = tpu.assume_multiple %22, 8 : i32
    %24 = arith.index_cast %23 : i32 to index
    %c0_15 = arith.constant 0 : index
    %25 = vector.load %arg4[%24, %c0_15] : memref<8x16xf32, #tpu.memory_space<vmem>>, vector<8x16xf32>
    %c0_16 = arith.constant 0 : index
    %c0_17 = arith.constant 0 : index
    %26 = vector.load %arg7[%c0_16, %c0_17] : memref<16x128xf32, #tpu.memory_space<vmem>>, vector<16x128xf32>
    %cst_18 = arith.constant dense<0.000000e+00> : vector<8x128xf32>
    %27 = tpu.matmul %25, %26, %cst_18 {dimension_numbers = #tpu.dot_dimension_numbers<[1], [0], [0], [1], [0, 0, 1, 1], [], []>} : vector<8x16xf32>, vector<16x128xf32>, vector<8x128xf32> -> vector<8x128xf32>
    %28 = arith.addf %4, %21 : vector<8x128xf32>
    %29 = arith.addf %28, %27 : vector<8x128xf32>
    %c0_19 = arith.constant 0 : index
    %c0_20 = arith.constant 0 : index
    %30 = vector.load %arg8[%c0_19, %c0_20] : memref<8x128xf32, #tpu.memory_space<vmem>>, vector<8x128xf32>
    tpu.vector_store %arg8[%c0_19, %c0_20], %29 {strides = array<i32>} : memref<8x128xf32, #tpu.memory_space<vmem>>, vector<8x128xf32>,
    return
  }
  func.func @transform_0(%arg0: i32) -> (i32, i32) {
    %c0_i32 = arith.constant 0 : i32
    %c0_i32_0 = arith.constant 0 : i32
    return %arg0, %c0_i32 : i32, i32
  }
  func.func @transform_1(%arg0: i32) -> (i32, i32) {
    %c0_i32 = arith.constant 0 : i32
    %c0_i32_0 = arith.constant 0 : i32
    return %arg0, %c0_i32 : i32, i32
  }
  func.func @transform_2(%arg0: i32) -> (i32, i32) {
    %c0_i32 = arith.constant 0 : i32
    %c0_i32_0 = arith.constant 0 : i32
    return %arg0, %c0_i32 : i32, i32
  }
  func.func @transform_3(%arg0: i32) -> (i32, i32) {
    %c0_i32 = arith.constant 0 : i32
    %c0_i32_0 = arith.constant 0 : i32
    %c0_i32_1 = arith.constant 0 : i32
    return %c0_i32, %c0_i32_0 : i32, i32
  }
  func.func @transform_4(%arg0: i32) -> (i32, i32) {
    %c0_i32 = arith.constant 0 : i32
    %c0_i32_0 = arith.constant 0 : i32
    %c0_i32_1 = arith.constant 0 : i32
    return %c0_i32, %c0_i32_0 : i32, i32
  }
  func.func @transform_5(%arg0: i32) -> (i32, i32) {
    %c0_i32 = arith.constant 0 : i32
    %c0_i32_0 = arith.constant 0 : i32
    %c0_i32_1 = arith.constant 0 : i32
    return %c0_i32, %c0_i32_0 : i32, i32
  }
  func.func @transform_6(%arg0: i32) -> (i32, i32) {
    %c0_i32 = arith.constant 0 : i32
    %c0_i32_0 = arith.constant 0 : i32
    %c0_i32_1 = arith.constant 0 : i32
    return %c0_i32, %c0_i32_0 : i32, i32
  }
  func.func @transform_7(%arg0: i32) -> (i32, i32) {
    %c0_i32 = arith.constant 0 : i32
    %c0_i32_0 = arith.constant 0 : i32
    return %arg0, %c0_i32 : i32, i32
  }
}

</mosaic_0001>

<bundles_post_ra>
// kernel: gcn_layer_forward.1
= control target key start
LH: loop header
LB: loop body
LE: loop exit
PB: predicated region body
PF: predicated region fallthrough
CT: control target
= control target key end

     0   :  { %vm29_vm0 = vcmask 64512   ;;  %v353_v2 = vmov 0.0   ;;  %vm354_vm1 = vmmov 0   ;;  %s435_s0 = inlined_call_operand.vmem [shape: f32[8,8], index: 0, kind: input, shape index: {}]   ;;  %s436_s1 = inlined_call_operand.vmem [shape: f32[8,8], index: 1, kind: input, shape index: {}]   ;;  %s437_s2 = inlined_call_operand.vmem [shape: f32[8,8], index: 2, kind: input, shape index: {}]   ;;  %s438_s3 = inlined_call_operand.vmem [shape: f32[8,16], index: 3, kind: input, shape index: {}]   ;;  %s439_s4 = inlined_call_operand.vmem [shape: f32[16,128], index: 4, kind: input, shape index: {}]   ;;  %s440_s5 = inlined_call_operand.vmem [shape: f32[8,128], index: 5, kind: input, shape index: {}]   ;;  %s441_s6 = inlined_call_operand.vmem [shape: f32[16,128], index: 6, kind: input, shape index: {}]   ;;  %s442_s7 = inlined_call_operand.hbm [shape: f32[8,128], index: 7, kind: output, shape index: {}]  }
   0x1   :  { %v28_v0 = vld [vmem:[%s438_s3] sm:$0xff]  ;;  %309 = vmatprep.subr.mxu0 %v353_v2  ;;  %311 = vmatprep.mubr.msk.f32.mxu0 %vm354_vm1, %v353_v2  ;;  %v104_v3 = vld [vmem:[%s439_s4 + $0x8] sm:$0xff] }
   0x2   :  { %v27_v1 = vld [vmem:[%s435_s0] sm:$0xff]  ;;  %v132_v4 = vld [vmem:[%s441_s6 + $0x8] sm:$0xff] }
   0x3   :  { %12 = vsyncpa [#allocation3], 0  ;;  %310 = vmatpush3.msra.mxu0 %v28_v0  ;;  %314 = vmatprep.subr.mxu1 %v353_v2  ;;  %v103_v5 = vld [vmem:[%s439_s4] sm:$0xff]  ;;  %vm133_vm2 = vcmask 130048   ;;  %s355_s15 = smov [#allocation2]  }
   0x4   :  { %312 = vmatmul.mubr.msk.f32.vlgmr.msra.gmra.mxu0 %vm29_vm0, %v27_v1  ;;  %321 = vmatprep.subr.mxu0 %v353_v2  ;;  %v131_v6 = vld [vmem:[%s441_s6] sm:$0xff]  ;;  %s288_s16 = sshll.u32 %s355_s15, 4  ;;  %s289_s16 = int_to_ptr.vmem [resolvable:$true] %s288_s16 }
   0x5   :  { %322 = vmatpush3.msra.mxu0 %v104_v3  ;;  %315 = vmatpush3.msra.mxu1 %v132_v4  ;;  %v105_v7 = vld [vmem:[%s436_s1] sm:$0xff]  ;;  %s331_s17 = scalar_lea.vmem %s289_s16, 128  ;;  %p336_p1 = scmp.lt.s32.totalorder %s289_s16, %s289_s16 }
   0x6   :  { %323 = vmatprep.subr.mxu0 %v353_v2  ;;  %316 = vmatprep.subr.mxu1 %v353_v2  ;;  %v110_v8 = vld [vmem:[%s437_s2] sm:$0xff]  ;;  %v106_v9 = vmul.f32 %v105_v7, %v27_v1  ;;  %p332_p0 = scmp.ne.s32.totalorder %s289_s16, %s331_s17  ;;  %p337_p2 = scmp.lt.s32.totalorder %s331_s17, %s331_s17 }
   0x7   :  { %324 = vmatpush3.msra.mxu0 %v103_v5  ;;  %318 = vmatprep.mubr.msk.f32.mxu1 %vm354_vm1, %v353_v2  ;;  %v111_v10 = vmul.f32 %v110_v8, %v27_v1  ;;  %v297_v18 = vld [vmem:[%s440_s5] ss:$0 sm:$0xff]  ;;  %v298_v19 = vld [vmem:[%s440_s5 + $0x1] ss:$0 sm:$0xff] }
   0x8   :  { %325 = vmatprep.mubr.msk.f32.mxu0 %vm354_vm1, %v353_v2  ;;  %317 = vmatpush3.msra.mxu1 %v131_v6  ;;  %v107_v11 = vsel %vm29_vm0, %v106_v9, 0.0  ;;  %p338_p3 = por %p337_p2, %p336_p1 }
   0x9   :  { %319 = vmatmul.mubr.msk.f32.vlgmr.msra.gmra.mxu1 %vm133_vm2, %v28_v0  ;;  %108 = vadd.xlane.f32.xlu0 %v107_v11  ;;  %v112_v12 = vsel %vm29_vm0, %v111_v10, 0.0 }
   0xa   :  { %p339_p4 = pnand %p338_p3, %p332_p0 }
   0xd   :  { %113 = vadd.xlane.f32.xlu0 %v112_v12 }
  0x92   :  { %v109_v17 = vpop.xlane.xlu0 %108 }
  0x93   :  { %v120_v21 = vmul.f32 %v297_v18, %v109_v17 }
  0x96   :  { %v114_v20 = vpop.xlane.xlu0 %113 }
  0x97   :  { %v126_v22 = vmul.f32 %v298_v19, %v114_v20 }
  0x99   :  { %v127_v23 = vadd.f32 %v126_v22, %v120_v21 }
  0xc4   :  { %v99_v13 = vpop.f32.mrf.mxu0 }
  0xc5   :  { %326 = vmatmul.mubr.msk.f32.vlgmr.msra.gmra.mxu0 %vm133_vm2, %v99_v13 }
  0xc6   :  { %v313_v14 = vpop.f32.mrf.mxu0 }
  0xc9   :  { %v203_v15 = vpop.f32.mrf.mxu1 }
  0xcb   :  { %v320_v16 = vpop.f32.mrf.mxu1 }
 0x185   :  { %v276_v24 = vpop.f32.mrf.mxu0 }
 0x186   :  { %v277_v25 = vadd.f32 %v276_v24, %v127_v23 }
 0x187   :  { %v327_v26 = vpop.f32.mrf.mxu0 }
 0x188   :  { %v280_v27 = vadd.f32 %v277_v25, %v203_v15 }
 0x18a   :  { %281 = vst [vmem:[#allocation2] sm:$0xff] %v280_v27 }
 0x18b   :  { %342 = shalt.err (!%p339_p4)
}
 0x18c   :  { %291 = dma.vmem_to_hbm [thread:$0]  %s289_s16, 128, %s442_s7, [#allocation3]  }
 0x18d   :  { %351 = dma.done.wait [#allocation3], 128  }
 0x18e   :  { %352 = vsyncadd [#allocation3], 4294967168 }
 0x18f   :  { %295 = vsyncpa [#allocation3], 1 }

</bundles_post_ra>
